<compile_context>
chip_gen: v6e
topology: v6e:2x2x1
jax: 0.10.0
libtpu: 0.0.40
codegen_flags: <defaults>
</compile_context>

<pallas_src>
import functools

import jax
import jax.numpy as jnp
from jax.experimental import pallas as pl
from jax.experimental.pallas import tpu as pltpu


def _round_up(x, m):
    return ((x + m - 1) // m) * m


def _mlp_kernel(n_hidden, *refs):
    # refs = (x_ref, wT_0, b_0, ..., wT_{H-1}, b_{H-1}, w_last, b_last, o_ref)
    x_ref = refs[0]                                     # (TILE_B, in_dim) f32
    o_ref = refs[-1]                                     # (1, TILE_B) f32
    p = refs[1:-1]

    # First hidden layer: contract x's last (feature) axis so the batch lands
    # on lanes without any wrapper-side transpose:
    #   (out0, in) x (TILE_B, in)^T -> (out0, TILE_B)
    w0 = p[0][...]                                       # (out0, in)
    b0 = p[1][...]                                       # (out0, 1) lane-bcast
    h = jax.lax.dot_general(
        w0, x_ref[...],
        dimension_numbers=(((1,), (1,)), ((), ())),
        precision=jax.lax.Precision.HIGHEST,
        preferred_element_type=jnp.float32) + b0
    h = jnp.maximum(h, 0.0)

    # Remaining hidden layers: standard (out, in) x (in, TILE_B) MXU matmuls.
    for layer in range(1, n_hidden):
        w = p[2 * layer][...]                            # (out, in)
        b = p[2 * layer + 1][...]                        # (out, 1)
        h = jax.lax.dot_general(
            w, h,
            dimension_numbers=(((1,), (0,)), ((), ())),
            precision=jax.lax.Precision.HIGHEST,
            preferred_element_type=jnp.float32) + b
        h = jnp.maximum(h, 0.0)

    # Final layer (out_features == 1): VPU multiply + sublane reduce keeps the
    # result lane-dense (1, TILE_B) and skips an N=1 MXU push/pop round trip.
    w_last = p[2 * n_hidden][...]                        # (in_last, 1)
    b_last = p[2 * n_hidden + 1][...]                    # (1, 1)
    o_ref[...] = jnp.sum(w_last * h, axis=0, keepdims=True) + b_last


def _auto_tile_cap(in_dim, hidden_dims):
    """Largest tile_b whose worst-case per-step VMEM stays under ~14 MiB.

    Budget: double-buffered (tile_b, in_dim) input block at its lane-padded
    size (the narrow minor dim rounds up to 128 lanes in VMEM), ~4 live
    (hid, tile_b) f32 activation temps, and the double-buffered sublane-padded
    (1, tile_b) output block.  Keeps v5e's 16 MiB default scoped limit safe;
    v6e/v7x defaults (32 MiB) have even more headroom.
    """
    max_hid = max(hidden_dims)
    per_row_bytes = 4 * (2 * _round_up(in_dim, 128)      # x block, double-buffered
                         + 4 * max_hid                   # live activation temps
                         + 2 * 8)                        # out block, double-buffered
    budget = 14 * 1024 * 1024
    return max(128, (budget // per_row_bytes) // 128 * 128)


def value_function_forward(x, params, *, tile_b=8192):
    """x: (B, in_dim) float32.  params: list of (W:(in,out), b:(out,)) per layer."""
    n_layers = len(params)
    n_hidden = n_layers - 1
    if n_hidden < 1:
        raise ValueError("ValueFunction always has >= 1 hidden layer (n_hids >= 1).")
    B, in_dim = x.shape
    hidden_dims = [params[layer][0].shape[1] for layer in range(n_hidden)]

    # --- batch tile selection -------------------------------------------------
    if B <= 128:
        # Single full-array block: no padding / ragged handling anywhere.
        tile_b = B
    else:
        b_ceil = _round_up(B, 128)
        tile_b = max(128, min(_round_up(tile_b, 128), b_ceil,
                              _auto_tile_cap(in_dim, hidden_dims)))
        # v7x megacore: if the whole batch fits in one tile, split it so both
        # TensorCores get a grid step (harmless on v5e/v6e).
        if pl.cdiv(B, tile_b) == 1:
            tile_b = _round_up(pl.cdiv(b_ceil, 2), 128)
    n_tiles = pl.cdiv(B, tile_b)
    b_pad = n_tiles * tile_b

    # Kernel-side parameter layout (done once, host/JAX side; tiny arrays):
    #   hidden layers: W -> (out, in), b -> (out, 1)
    #   final layer  : W -> (in, 1),   b -> (1, 1)
    flat_params = []
    for layer, (w, b) in enumerate(params):
        if layer < n_hidden:
            flat_params.extend([w.T, b.reshape(-1, 1)])
        else:
            flat_params.extend([w.reshape(-1, 1), b.reshape(1, 1)])

    kernel = functools.partial(_mlp_kernel, n_hidden)

    # x / out are streamed per batch tile; x is read straight from HBM as
    # (tile_b, in_dim) blocks (the ragged last block is padded by the pipeline
    # with unspecified rows -- sliced off below).  Weights & biases use a
    # constant index_map so Pallas keeps them VMEM-resident across grid steps.
    in_specs = [pl.BlockSpec((tile_b, in_dim), lambda i: (i, 0))]
    in_specs += [pl.BlockSpec(p.shape, lambda i: (0, 0)) for p in flat_params]
    out_spec = pl.BlockSpec((1, tile_b), lambda i: (0, i))

    out = pl.pallas_call(
        kernel,
        out_shape=jax.ShapeDtypeStruct((1, b_pad), jnp.float32),
        grid=(n_tiles,),
        in_specs=in_specs,
        out_specs=out_spec,
        compiler_params=pltpu.CompilerParams(
            dimension_semantics=("parallel",)),
    )(x, *flat_params)

    # PyTorch .squeeze(): drop size-1 dims -> (B,) (0-d scalar if B == 1).
    return jnp.squeeze(out[:, :B])


def init_params(key, dims):
    """Deterministic MLP params (PyTorch-style uniform). dims=[in, hid,.., 1]."""
    params = []
    for i in range(len(dims) - 1):
        key, wk, bk = jax.random.split(key, 3)
        scale = 1.0 / jnp.sqrt(jnp.float32(dims[i]))
        w = jax.random.uniform(wk, (dims[i], dims[i + 1]), jnp.float32, -scale, scale)
        b = jax.random.uniform(bk, (dims[i + 1],), jnp.float32, -scale, scale)
        params.append((w, b))
    return params


def reference_forward(x, params):
    h = x
    for i, (w, b) in enumerate(params):
        h = jnp.dot(h, w, precision=jax.lax.Precision.HIGHEST) + b
        if i < len(params) - 1:
            h = jnp.maximum(h, 0.0)
    return jnp.squeeze(h)


if __name__ == "__main__":
    # Module-consistent small shapes: goal=4 -> input_dim=8, hid_size=32, n_hids=2
    goal = 4
    input_dim = 2 * goal
    hid_size = 32
    n_hids = 2

    dims = [input_dim] + [hid_size] * n_hids + [1]
    params = init_params(jax.random.PRNGKey(0), dims)

    key = jax.random.PRNGKey(0)
    key, xk = jax.random.split(key)
    x = jax.random.normal(xk, (8, input_dim), dtype=jnp.float32)

    # Tiny batch: single full-array block (no padding anywhere).
    v = value_function_forward(x, params)
    jax.block_until_ready(v)
    v_ref = reference_forward(x, params)
    assert v.shape == (8,)
    assert jnp.allclose(v, v_ref, atol=1e-4, rtol=1e-4)

    # Default tile selection on a non-128-multiple batch: splits into 2 grid
    # steps (v7x 2-TC heuristic) with a ragged last block handled by the
    # pipeline, weights staying VMEM-resident across steps.
    key, xk2 = jax.random.split(key)
    x2 = jax.random.normal(xk2, (300, input_dim), dtype=jnp.float32)
    v2 = value_function_forward(x2, params)
    jax.block_until_ready(v2)
    v2_ref = reference_forward(x2, params)
    assert v2.shape == (300,)
    assert jnp.allclose(v2, v2_ref, atol=1e-4, rtol=1e-4)

    # Explicit small tile -> 3 grid steps (multi-tile + ragged edge).
    v3 = value_function_forward(x2, params, tile_b=128)
    jax.block_until_ready(v3)
    assert v3.shape == (300,)
    assert jnp.allclose(v3, v2_ref, atol=1e-4, rtol=1e-4)

    print("KERNEL_OK")
</pallas_src>

<mosaic_0001>
module attributes {stable_mosaic.version = 11 : i64} {
  func.func @_mlp_kernel(%arg0: i32, %arg1: memref<8x8xf32, #tpu.memory_space<vmem>>, %arg2: memref<32x8xf32, #tpu.memory_space<vmem>>, %arg3: memref<32x1xf32, #tpu.memory_space<vmem>>, %arg4: memref<32x32xf32, #tpu.memory_space<vmem>>, %arg5: memref<32x1xf32, #tpu.memory_space<vmem>>, %arg6: memref<32x1xf32, #tpu.memory_space<vmem>>, %arg7: memref<1x1xf32, #tpu.memory_space<vmem>>, %arg8: memref<1x8xf32, #tpu.memory_space<vmem>>) attributes {dimension_semantics = [#tpu.dimension_semantics<parallel>], iteration_bounds = array<i64: 1>, scalar_prefetch = 0 : i64, scratch_operands = 0 : i64, tpu.core_type = #tpu.core_type<tc>, window_params = [{transform_indices = @transform_0, window_bounds = array<i64: 8, 8>}, {pipeline_mode = #tpu.pipeline_mode<synchronous>, transform_indices = @transform_1, window_bounds = array<i64: 32, 8>}, {pipeline_mode = #tpu.pipeline_mode<synchronous>, transform_indices = @transform_2, window_bounds = array<i64: 32, 1>}, {pipeline_mode = #tpu.pipeline_mode<synchronous>, transform_indices = @transform_3, window_bounds = array<i64: 32, 32>}, {pipeline_mode = #tpu.pipeline_mode<synchronous>, transform_indices = @transform_4, window_bounds = array<i64: 32, 1>}, {pipeline_mode = #tpu.pipeline_mode<synchronous>, transform_indices = @transform_5, window_bounds = array<i64: 32, 1>}, {pipeline_mode = #tpu.pipeline_mode<synchronous>, transform_indices = @transform_6, window_bounds = array<i64: 1, 1>}, {transform_indices = @transform_7, window_bounds = array<i64: 1, 8>}]} {
    %c0 = arith.constant 0 : index
    %c0_0 = arith.constant 0 : index
    %0 = vector.load %arg2[%c0, %c0_0] : memref<32x8xf32, #tpu.memory_space<vmem>>, vector<32x8xf32>
    %c0_1 = arith.constant 0 : index
    %c0_2 = arith.constant 0 : index
    %1 = vector.load %arg3[%c0_1, %c0_2] : memref<32x1xf32, #tpu.memory_space<vmem>>, vector<32x1xf32>
    %c0_3 = arith.constant 0 : index
    %c0_4 = arith.constant 0 : index
    %2 = vector.load %arg1[%c0_3, %c0_4] : memref<8x8xf32, #tpu.memory_space<vmem>>, vector<8x8xf32>
    %cst = arith.constant dense<0.000000e+00> : vector<32x8xf32>
    %3 = tpu.matmul %0, %2, %cst {dimension_numbers = #tpu.dot_dimension_numbers<[1], [1], [0], [0], [0, 0, 1, 0], [], []>, precision = #tpu.contract_precision<fp32>} : vector<32x8xf32>, vector<8x8xf32>, vector<32x8xf32> -> vector<32x8xf32>
    %4 = vector.broadcast %1 : vector<32x1xf32> to vector<32x8xf32>
    %5 = arith.addf %3, %4 : vector<32x8xf32>
    %cst_5 = arith.constant 0.000000e+00 : f32
    %6 = vector.broadcast %cst_5 : f32 to vector<32x8xf32>
    %7 = arith.maximumf %5, %6 : vector<32x8xf32>
    %c0_6 = arith.constant 0 : index
    %c0_7 = arith.constant 0 : index
    %8 = vector.load %arg4[%c0_6, %c0_7] : memref<32x32xf32, #tpu.memory_space<vmem>>, vector<32x32xf32>
    %c0_8 = arith.constant 0 : index
    %c0_9 = arith.constant 0 : index
    %9 = vector.load %arg5[%c0_8, %c0_9] : memref<32x1xf32, #tpu.memory_space<vmem>>, vector<32x1xf32>
    %cst_10 = arith.constant dense<0.000000e+00> : vector<32x8xf32>
    %10 = tpu.matmul %8, %7, %cst_10 {dimension_numbers = #tpu.dot_dimension_numbers<[1], [0], [0], [1], [0, 0, 1, 1], [], []>, precision = #tpu.contract_precision<fp32>} : vector<32x32xf32>, vector<32x8xf32>, vector<32x8xf32> -> vector<32x8xf32>
    %11 = vector.broadcast %9 : vector<32x1xf32> to vector<32x8xf32>
    %12 = arith.addf %10, %11 : vector<32x8xf32>
    %cst_11 = arith.constant 0.000000e+00 : f32
    %13 = vector.broadcast %cst_11 : f32 to vector<32x8xf32>
    %14 = arith.maximumf %12, %13 : vector<32x8xf32>
    %c0_12 = arith.constant 0 : index
    %c0_13 = arith.constant 0 : index
    %15 = vector.load %arg6[%c0_12, %c0_13] : memref<32x1xf32, #tpu.memory_space<vmem>>, vector<32x1xf32>
    %c0_14 = arith.constant 0 : index
    %c0_15 = arith.constant 0 : index
    %16 = vector.load %arg7[%c0_14, %c0_15] : memref<1x1xf32, #tpu.memory_space<vmem>>, vector<1x1xf32>
    %17 = vector.broadcast %15 : vector<32x1xf32> to vector<32x8xf32>
    %18 = arith.mulf %17, %14 : vector<32x8xf32>
    %cst_16 = arith.constant dense<0.000000e+00> : vector<8xf32>
    %19 = vector.multi_reduction <add>, %18, %cst_16 [0] : vector<32x8xf32> to vector<8xf32>
    %20 = vector.shape_cast %19 : vector<8xf32> to vector<1x8xf32>
    %21 = vector.broadcast %16 : vector<1x1xf32> to vector<1x8xf32>
    %22 = arith.addf %20, %21 : vector<1x8xf32>
    %c0_17 = arith.constant 0 : index
    %c0_18 = arith.constant 0 : index
    %23 = vector.load %arg8[%c0_17, %c0_18] : memref<1x8xf32, #tpu.memory_space<vmem>>, vector<1x8xf32>
    tpu.vector_store %arg8[%c0_17, %c0_18], %22 {strides = array<i32>} : memref<1x8xf32, #tpu.memory_space<vmem>>, vector<1x8xf32>,
    return
  }
  func.func @transform_0(%arg0: i32) -> (i32, i32) {
    %c0_i32 = arith.constant 0 : i32
    %c0_i32_0 = arith.constant 0 : i32
    return %arg0, %c0_i32 : i32, i32
  }
  func.func @transform_1(%arg0: i32) -> (i32, i32) {
    %c0_i32 = arith.constant 0 : i32
    %c0_i32_0 = arith.constant 0 : i32
    %c0_i32_1 = arith.constant 0 : i32
    return %c0_i32, %c0_i32_0 : i32, i32
  }
  func.func @transform_2(%arg0: i32) -> (i32, i32) {
    %c0_i32 = arith.constant 0 : i32
    %c0_i32_0 = arith.constant 0 : i32
    %c0_i32_1 = arith.constant 0 : i32
    return %c0_i32, %c0_i32_0 : i32, i32
  }
  func.func @transform_3(%arg0: i32) -> (i32, i32) {
    %c0_i32 = arith.constant 0 : i32
    %c0_i32_0 = arith.constant 0 : i32
    %c0_i32_1 = arith.constant 0 : i32
    return %c0_i32, %c0_i32_0 : i32, i32
  }
  func.func @transform_4(%arg0: i32) -> (i32, i32) {
    %c0_i32 = arith.constant 0 : i32
    %c0_i32_0 = arith.constant 0 : i32
    %c0_i32_1 = arith.constant 0 : i32
    return %c0_i32, %c0_i32_0 : i32, i32
  }
  func.func @transform_5(%arg0: i32) -> (i32, i32) {
    %c0_i32 = arith.constant 0 : i32
    %c0_i32_0 = arith.constant 0 : i32
    %c0_i32_1 = arith.constant 0 : i32
    return %c0_i32, %c0_i32_0 : i32, i32
  }
  func.func @transform_6(%arg0: i32) -> (i32, i32) {
    %c0_i32 = arith.constant 0 : i32
    %c0_i32_0 = arith.constant 0 : i32
    %c0_i32_1 = arith.constant 0 : i32
    return %c0_i32, %c0_i32_0 : i32, i32
  }
  func.func @transform_7(%arg0: i32) -> (i32, i32) {
    %c0_i32 = arith.constant 0 : i32
    %c0_i32_0 = arith.constant 0 : i32
    return %c0_i32, %arg0 : i32, i32
  }
}

</mosaic_0001>

<bundles_post_ra>
// kernel: tpu_custom_call.1
= control target key start
LH: loop header
LB: loop body
LE: loop exit
PB: predicated region body
PF: predicated region fallthrough
CT: control target
= control target key end

     0   :  { %s1869_s0 = inlined_call_operand.vmem [shape: f32[8,8], index: 0, kind: input, shape index: {}]   ;;  %s1870_s1 = inlined_call_operand.vmem [shape: f32[32,8], index: 1, kind: input, shape index: {}]   ;;  %s1871_s2 = inlined_call_operand.vmem [shape: f32[32,1], index: 2, kind: input, shape index: {}]   ;;  %s1872_s3 = inlined_call_operand.vmem [shape: f32[32,32], index: 3, kind: input, shape index: {}]   ;;  %s1873_s4 = inlined_call_operand.vmem [shape: f32[32,1], index: 4, kind: input, shape index: {}]   ;;  %s1874_s5 = inlined_call_operand.vmem [shape: f32[32,1], index: 5, kind: input, shape index: {}]   ;;  %s1875_s6 = inlined_call_operand.<no memory space> [shape: f32[1,1], index: 6, kind: input, shape index: {}]   ;;  %s1876_s7 = inlined_call_operand.hbm [shape: f32[1,8], index: 7, kind: output, shape index: {}]  }
   0x1   :  { %v12_v0 = vstv %s1875_s6 }
   0x2   :  { %13 = vst [vmem:[#allocation2] sm:$0x1] %v12_v0 }
   0x3   :  { %v37_v1 = vld [vmem:[%s1869_s0] sm:$0xff]  ;;  %vm58_vm0 = vcmask 64512   ;;  %v30_v3 = vld [vmem:[%s1870_s1 + $0x8] sm:$0xff]  ;;  %v31_v7 = vld [vmem:[%s1870_s1 + $0x10] sm:$0xff]  ;;  %v1616_v9 = vmov 0  }
   0x4   :  { %v29_v2 = vld [vmem:[%s1870_s1] sm:$0xff]  ;;  %v72_v4 = vsel %vm58_vm0, %v37_v1, 0  ;;  %v63_v6 = vsel %vm58_vm0, %v30_v3, 0  ;;  %v32_v8 = vld [vmem:[%s1870_s1 + $0x18] sm:$0xff]  ;;  %1592 = vset.pattern.permute.xlu0 %v1616_v9  ;;  %1593 = vset.pattern.permute.xlu1 %v1616_v9  ;;  %v66_v14 = vsel %vm58_vm0, %v31_v7, 0  ;;  %v35_v17 = vld [vmem:[%s1871_s2 + $0x10] sm:$0xff] }
   0x5   :  { %v60_v5 = vsel %vm58_vm0, %v29_v2, 0  ;;  %v36_v10 = vld [vmem:[%s1871_s2 + $0x18] sm:$0xff]  ;;  %v1682_v11 = vand.u32 4294901760, %v72_v4  ;;  %v1686_v13 = vand.u32 4294901760, %v63_v6  ;;  %v1689_v15 = vand.u32 4294901760, %v66_v14  ;;  %v34_v18 = vld [vmem:[%s1871_s2 + $0x8] sm:$0xff] }
   0x6   :  { %v1684_v12 = vand.u32 4294901760, %v60_v5  ;;  %55 = vperm.xlu0 %1592, %v36_v10   ;;  %v69_v16 = vsel %vm58_vm0, %v32_v8, 0  ;;  %45 = vperm.xlu1 %1593, %v34_v18   ;;  %v33_v28 = vld [vmem:[%s1871_s2] sm:$0xff] }
   0x7   :  { %1458 = vmatprep.subr.mxu0 %v1682_v11  ;;  %v212_v20 = vsub.f32 %v72_v4, %v1682_v11  ;;  %v151_v21 = vsub.f32 %v63_v6, %v1686_v13  ;;  %v1703_v22 = vand.u32 4294901760, %v69_v16  ;;  %v161_v23 = vsub.f32 %v66_v14, %v1689_v15 }
   0x8   :  { %v141_v19 = vsub.f32 %v60_v5, %v1684_v12  ;;  %1468 = vmatprep.mubr.f32.mxu1 %v1684_v12  ;;  %1459 = vmatpush3.xpose.msra.mxu0 %v1682_v11 }
   0x9   :  { %v213_v25 = vand.u32 4294901760, %v212_v20  ;;  %v152_v26 = vand.u32 4294901760, %v151_v21  ;;  %1474 = vmatprep.subr.mxu0 %v212_v20  ;;  %v171_v27 = vsub.f32 %v69_v16, %v1703_v22 }
   0xa   :  { %v142_v24 = vand.u32 4294901760, %v141_v19  ;;  %50 = vperm.xlu0 %1592, %v35_v17  }
   0xb   :  { %14 = vsyncpa [#allocation4], 0  ;;  %v162_v29 = vand.u32 4294901760, %v161_v23  ;;  %v657_v30 = vld [vmem:[%s1873_s4] sm:$0xff]  ;;  %v214_v32 = vsub.f32 %v212_v20, %v213_v25  ;;  %v153_v33 = vsub.f32 %v151_v21, %v152_v26  ;;  %v172_v34 = vand.u32 4294901760, %v171_v27  ;;  %40 = vperm.xlu1 %1593, %v33_v28   ;;  %v659_v42 = vld [vmem:[%s1873_s4 + $0x10] sm:$0xff] }
   0xc   :  { %v143_v31 = vsub.f32 %v141_v19, %v142_v24  ;;  %v658_v43 = vld [vmem:[%s1873_s4 + $0x8] sm:$0xff]  ;;  %v1312_v44 = vld [vmem:[%s1874_s5] sm:$0xff]  ;;  %v660_v45 = vld [vmem:[%s1873_s4 + $0x18] sm:$0xff]  ;;  %vm681_vm1 = vcmask 261120   ;;  %vm1364_vm2 = vcmask 57344  }
   0xd   :  { %v163_v35 = vsub.f32 %v161_v23, %v162_v29  ;;  %v215_v37 = vand.u32 4294901760, %v214_v32  ;;  %v154_v38 = vand.u32 4294901760, %v153_v33  ;;  %v173_v39 = vsub.f32 %v171_v27, %v172_v34  ;;  %v1314_v46 = vld [vmem:[%s1874_s5 + $0x10] sm:$0xff]  ;;  %v1313_v47 = vld [vmem:[%s1874_s5 + $0x8] sm:$0xff]  ;;  %v1316_v48 = vld [vmem:[#allocation2] sm:$0x1] }
   0xe   :  { %v144_v36 = vand.u32 4294901760, %v143_v31  ;;  %663 = vperm.xlu0 %1592, %v657_v30   ;;  %v1315_v49 = vld [vmem:[%s1874_s5 + $0x18] sm:$0xff]  ;;  %v653_v50 = vld [vmem:[%s1872_s3] sm:$0xff]  ;;  %v654_v16 = vld [vmem:[%s1872_s3 + $0x8] sm:$0xff] }
   0xf   :  { %v164_v40 = vand.u32 4294901760, %v163_v35  ;;  %1466 = vmatprep.subr.mxu1 %v215_v37  ;;  %v174_v41 = vand.u32 4294901760, %v173_v39  ;;  %668 = vperm.xlu1 %1593, %v658_v43   ;;  %v683_v51 = vsel %vm681_vm1, %v653_v50, 0  ;;  %v656_v32 = vld [vmem:[%s1872_s3 + $0x18] sm:$0xff] }
  0x10   :  { %1460 = vmatprep.mubr.f32.mxu0 %v144_v36  ;;  %1467 = vmatpush3.xpose.msra.mxu1 %v215_v37  ;;  %v1754_v52 = vand.u32 4294901760, %v683_v51 }
  0x11   :  { %1461 = vmatmul.mubr.f32.vlgmr.msra.gmra.mxu0 %v154_v38  ;;  %1482 = vmatprep.subr.mxu1 %v1682_v11 }
  0x12   :  { %1475 = vmatpush3.xpose.msra.mxu0 %v212_v20  ;;  %1463 = vmatprep.mubr.f32.mxu0 %v164_v40  ;;  %v1757_v53 = vsub.f32 %v683_v51, %v1754_v52 }
  0x13   :  { %1490 = vmatprep.subr.mxu0 %v213_v25  ;;  %1469 = vmatmul.mubr.f32.vlgmr.msra.gmra.mxu1 %v1686_v13 }
  0x14   :  { %673 = vperm.xlu0 %1592, %v659_v42   ;;  %1483 = vmatpush3.xpose.msra.mxu1 %v1682_v11  ;;  %v765_v54 = vand.u32 4294901760, %v1757_v53 }
  0x15   :  { %1464 = vmatmul.mubr.f32.gmra.mxu0 %v174_v41  ;;  %1471 = vmatprep.mubr.f32.mxu1 %v1689_v15  ;;  %v692_v41 = vsel %vm681_vm1, %v656_v32, 0 }
  0x16   :  { %1476 = vmatprep.mubr.f32.mxu0 %v141_v19  ;;  %1498 = vmatprep.subr.mxu1 %v1682_v11  ;;  %v766_v55 = vsub.f32 %v1757_v53, %v765_v54 }
  0x17   :  { %1472 = vmatmul.mubr.f32.gmra.mxu1 %v1703_v22  ;;  %678 = vperm.xlu1 %1593, %v660_v45  }
  0x18   :  { %1319 = vperm.xlu0 %1592, %v1312_v44   ;;  %1484 = vmatprep.mubr.f32.mxu1 %v142_v24  ;;  %v767_v56 = vand.u32 4294901760, %v766_v55  ;;  %v1783_v55 = vand.u32 4294901760, %v692_v41 }
  0x19   :  { %1477 = vmatmul.mubr.f32.vlgmr.msra.gmra.mxu0 %v151_v21 }
  0x1a   :  { %1491 = vmatpush3.xpose.msra.mxu0 %v213_v25  ;;  %1479 = vmatprep.mubr.f32.mxu0 %v161_v23  ;;  %v686_v25 = vsel %vm681_vm1, %v654_v16, 0 }
  0x1b   :  { %1485 = vmatmul.mubr.f32.vlgmr.msra.gmra.mxu1 %v152_v26  ;;  %1324 = vperm.xlu1 %1593, %v1313_v47   ;;  %v655_v26 = vld [vmem:[%s1872_s3 + $0x10] sm:$0xff]  ;;  %s1617_s3 = smov [#allocation3]  }
  0x1c   :  { %1329 = vperm.xlu0 %1592, %v1314_v46   ;;  %1499 = vmatpush3.xpose.msra.mxu1 %v1682_v11  ;;  %v689_v35 = vsel %vm681_vm1, %v655_v26, 0  ;;  %s1372_s13 = sshll.u32 %s1617_s3, 4  ;;  %s1373_s13 = int_to_ptr.vmem [resolvable:$true] %s1372_s13 }
  0x1d   :  { %1480 = vmatmul.mubr.f32.gmra.mxu0 %v171_v27  ;;  %1487 = vmatprep.mubr.f32.mxu1 %v162_v29  ;;  %v1778_v45 = vand.u32 4294901760, %v689_v35  ;;  %s1594_s14 = scalar_lea.vmem %s1373_s13, 16  ;;  %s1598_s15 = scalar_lea.vmem %s1373_s13, 32 }
  0x1e   :  { %1492 = vmatprep.mubr.f32.mxu0 %v1684_v12  ;;  %p1595_p0 = scmp.ne.s32.totalorder %s1373_s13, %s1594_s14  ;;  %p1599_p1 = scmp.lt.s32.totalorder %s1373_s13, %s1373_s13 }
  0x1f   :  { %1488 = vmatmul.mubr.f32.gmra.mxu1 %v172_v34  ;;  %1334 = vperm.xlu1 %1593, %v1315_v49   ;;  %v1774_v34 = vand.u32 4294901760, %v686_v25  ;;  %p1600_p2 = scmp.lt.s32.totalorder %s1598_s15, %s1594_s14 }
  0x20   :  { %1356 = vperm.xlu0 %1592, %v1316_v48   ;;  %1500 = vmatprep.mubr.f32.mxu1 %v1684_v12 }
  0x21   :  { %1493 = vmatmul.mubr.f32.vlgmr.msra.gmra.mxu0 %v1686_v13  ;;  %v1781_v49 = vsub.f32 %v686_v25, %v1774_v34  ;;  %p1601_p3 = por %p1600_p2, %p1599_p1 }
  0x22   :  { %1495 = vmatprep.mubr.f32.mxu0 %v1689_v15 }
  0x23   :  { %1501 = vmatmul.mubr.f32.vlgmr.msra.gmra.mxu1 %v1686_v13  ;;  %p1602_p4 = pnand %p1601_p3, %p1595_p0 }
  0x24   :  { %1503 = vmatprep.mubr.f32.mxu1 %v1689_v15 }
  0x25   :  { %1496 = vmatmul.mubr.f32.gmra.mxu0 %v1703_v22 }
  0x26   :  { %1514 = vmatprep.mubr.f32.mxu0 %v767_v56 }
  0x27   :  { %1504 = vmatmul.mubr.f32.gmra.mxu1 %v1703_v22 }
  0x28   :  { %1528 = vmatprep.mubr.f32.mxu1 %v1754_v52 }
  0x81   :  { %v46_v57 = vpop.permute.xlu1 %45  ;;  %v56_v61 = vpop.permute.xlu0 %55 }
  0x85   :  { %v51_v9 = vpop.permute.xlu0 %50 }
  0x86   :  { %v41_v1 = vpop.permute.xlu1 %40 }
  0xd1   :  { %v1462_v58 = vpop.f32.mrf.mxu0 }
  0xd2   :  { %v157_v63 = vadd.f32 %v1462_v58, %v46_v57 }
  0xd3   :  { %v146_v59 = vpop.f32.mrf.mxu0  ;;  %v1470_v60 = vpop.f32.mrf.mxu1 }
  0xd4   :  { %v147_v3 = vadd.f32 %v146_v59, %v41_v1  ;;  %v259_v6 = vadd.f32 %v1470_v60, %v157_v63  ;;  %v1788_v60 = vsub.f32 %v689_v35, %v1778_v45  ;;  %v775_v63 = vand.u32 4294901760, %v1781_v49  ;;  %v669_v35 = vpop.permute.xlu1 %668 }
  0xd5   :  { %v1465_v62 = vpop.f32.mrf.mxu0  ;;  %v252_v0 = vpop.f32.mrf.mxu1  ;;  %v1794_v1 = vsub.f32 %v692_v41, %v1783_v55 }
  0xd6   :  { %v177_v7 = vadd.f32 %v1465_v62, %v56_v61  ;;  %v253_v11 = vadd.f32 %v252_v0, %v147_v3 }
  0xd7   :  { %v166_v2 = vpop.f32.mrf.mxu0  ;;  %v1473_v4 = vpop.f32.mrf.mxu1 }
  0xd8   :  { %v167_v12 = vadd.f32 %v166_v2, %v51_v9  ;;  %v271_v17 = vadd.f32 %v1473_v4, %v177_v7 }
  0xd9   :  { %v1478_v5 = vpop.f32.mrf.mxu0  ;;  %v264_v8 = vpop.f32.mrf.mxu1 }
  0xda   :  { %v352_v13 = vadd.f32 %v1478_v5, %v259_v6  ;;  %v265_v21 = vadd.f32 %v264_v8, %v167_v12  ;;  %v785_v5 = vand.u32 4294901760, %v1788_v60  ;;  %v776_v8 = vsub.f32 %v1781_v49, %v775_v63 }
  0xdb   :  { %v344_v10 = vpop.f32.mrf.mxu0  ;;  %v1486_v14 = vpop.f32.mrf.mxu1 }
  0xdc   :  { %v345_v18 = vadd.f32 %v344_v10, %v253_v11  ;;  %v448_v22 = vadd.f32 %v1486_v14, %v352_v13  ;;  %v795_v10 = vand.u32 4294901760, %v1794_v1  ;;  %v786_v13 = vsub.f32 %v1788_v60, %v785_v5 }
  0xdd   :  { %v1481_v15 = vpop.f32.mrf.mxu0  ;;  %v439_v19 = vpop.f32.mrf.mxu1 }
  0xde   :  { %v366_v23 = vadd.f32 %v1481_v15, %v271_v17  ;;  %v440_v28 = vadd.f32 %v439_v19, %v345_v18  ;;  %v777_v15 = vand.u32 4294901760, %v776_v8  ;;  %v796_v18 = vsub.f32 %v1794_v1, %v795_v10 }
  0xdf   :  { %v358_v20 = vpop.f32.mrf.mxu0  ;;  %v1489_v24 = vpop.f32.mrf.mxu1 }
  0xe0   :  { %v359_v29 = vadd.f32 %v358_v20, %v265_v21  ;;  %v464_v36 = vadd.f32 %v1489_v24, %v366_v23  ;;  %v797_v25 = vand.u32 4294901760, %v796_v18 }
  0xe1   :  { %v1494_v27 = vpop.f32.mrf.mxu0  ;;  %v455_v31 = vpop.f32.mrf.mxu1 }
  0xe2   :  { %v544_v30 = vadd.f32 %v1494_v27, %v448_v22  ;;  %v456_v42 = vadd.f32 %v455_v31, %v359_v29  ;;  %v787_v22 = vand.u32 4294901760, %v786_v13 }
  0xe3   :  { %v537_v33 = vpop.f32.mrf.mxu0  ;;  %v1502_v38 = vpop.f32.mrf.mxu1 }
  0xe4   :  { %v538_v37 = vadd.f32 %v537_v33, %v440_v28  ;;  %v634_v39 = vadd.f32 %v1502_v38, %v544_v30  ;;  %v664_v38 = vpop.permute.xlu0 %663 }
  0xe5   :  { %v1497_v40 = vpop.f32.mrf.mxu0  ;;  %v627_v44 = vpop.f32.mrf.mxu1 }
  0xe6   :  { %v556_v43 = vadd.f32 %v1497_v40, %v464_v36  ;;  %v650_v46 = vmax.f32 %v634_v39, 0.0  ;;  %v628_v47 = vadd.f32 %v627_v44, %v538_v37 }
  0xe7   :  { %v549_v48 = vpop.f32.mrf.mxu0  ;;  %v1505_v51 = vpop.f32.mrf.mxu1 }
  0xe8   :  { %v550_v50 = vadd.f32 %v549_v48, %v456_v42  ;;  %v649_v56 = vmax.f32 %v628_v47, 0.0  ;;  %v646_v57 = vadd.f32 %v1505_v51, %v556_v43  ;;  %v1785_v58 = vand.u32 4294901760, %v650_v46  ;;  %v679_v42 = vpop.permute.xlu1 %678  ;;  %v674_v47 = vpop.permute.xlu0 %673 }
  0xe9   :  { %v639_v59 = vpop.f32.mrf.mxu1 }
  0xea   :  { %v652_v61 = vmax.f32 %v646_v57, 0.0  ;;  %v640_v62 = vadd.f32 %v639_v59, %v550_v50  ;;  %v1791_v0 = vand.u32 4294901760, %v649_v56  ;;  %v843_v4 = vsub.f32 %v650_v46, %v1785_v58 }
  0xec   :  { %v1796_v2 = vand.u32 4294901760, %v652_v61  ;;  %v651_v3 = vmax.f32 %v640_v62, 0.0  ;;  %v850_v9 = vsub.f32 %v649_v56, %v1791_v0  ;;  %v844_v14 = vand.u32 4294901760, %v843_v4 }
  0xee   :  { %v829_v6 = vsub.f32 %v652_v61, %v1796_v2  ;;  %v1801_v7 = vand.u32 4294901760, %v651_v3  ;;  %1506 = vmatprep.subr.mxu0 %v1796_v2  ;;  %v851_v19 = vand.u32 4294901760, %v850_v9  ;;  %v845_v23 = vsub.f32 %v843_v4, %v844_v14 }
  0xef   :  { %1507 = vmatpush3.msra.mxu0 %v1796_v2 }
  0xf0   :  { %v836_v11 = vsub.f32 %v651_v3, %v1801_v7  ;;  %1508 = vmatprep.subr.mxu0 %v1801_v7  ;;  %v830_v12 = vand.u32 4294901760, %v829_v6  ;;  %v852_v26 = vsub.f32 %v850_v9, %v851_v19  ;;  %v846_v27 = vand.u32 4294901760, %v845_v23 }
  0xf1   :  { %1509 = vmatpush3.msra.mxu0 %v1801_v7 }
  0xf2   :  { %1510 = vmatprep.subr.mxu0 %v1785_v58  ;;  %v831_v16 = vsub.f32 %v829_v6, %v830_v12  ;;  %v837_v17 = vand.u32 4294901760, %v836_v11  ;;  %v853_v28 = vand.u32 4294901760, %v852_v26 }
  0xf3   :  { %1511 = vmatpush3.msra.mxu0 %v1785_v58 }
  0xf4   :  { %1512 = vmatprep.subr.mxu0 %v1791_v0  ;;  %v832_v20 = vand.u32 4294901760, %v831_v16  ;;  %v838_v21 = vsub.f32 %v836_v11, %v837_v17 }
  0xf5   :  { %1513 = vmatpush3.msra.mxu0 %v1791_v0 }
  0xf6   :  { %1515 = vmatmul.mubr.f32.vlgmr.msra.gmra.mxu0 %v777_v15  ;;  %1520 = vmatprep.subr.mxu1 %v832_v20  ;;  %v839_v24 = vand.u32 4294901760, %v838_v21 }
  0xf7   :  { %1534 = vmatprep.subr.mxu0 %v829_v6  ;;  %1521 = vmatpush3.msra.mxu1 %v832_v20 }
  0xf8   :  { %1535 = vmatpush3.msra.mxu0 %v829_v6  ;;  %1522 = vmatprep.subr.mxu1 %v839_v24 }
  0xf9   :  { %1536 = vmatprep.subr.mxu0 %v836_v11  ;;  %1517 = vmatprep.mubr.f32.mxu0 %v787_v22 }
  0xfa   :  { %1523 = vmatpush3.msra.mxu1 %v839_v24  ;;  %1537 = vmatpush3.msra.mxu0 %v836_v11 }
  0xfb   :  { %1518 = vmatmul.mubr.f32.gmra.mxu0 %v797_v25  ;;  %1524 = vmatprep.subr.mxu1 %v846_v27 }
  0xfc   :  { %1538 = vmatprep.subr.mxu0 %v843_v4  ;;  %1525 = vmatpush3.msra.mxu1 %v846_v27 }
  0xfd   :  { %1539 = vmatpush3.msra.mxu0 %v843_v4  ;;  %1526 = vmatprep.subr.mxu1 %v853_v28 }
  0xfe   :  { %1540 = vmatprep.subr.mxu0 %v850_v9  ;;  %1527 = vmatpush3.msra.mxu1 %v853_v28 }
  0xff   :  { %1541 = vmatpush3.msra.mxu0 %v850_v9  ;;  %1529 = vmatmul.mubr.f32.vlgmr.msra.gmra.mxu1 %v1774_v34 }
 0x100   :  { %1542 = vmatprep.mubr.f32.mxu0 %v1757_v53  ;;  %1548 = vmatprep.subr.mxu1 %v1796_v2 }
 0x101   :  { %1562 = vmatprep.subr.mxu0 %v830_v12  ;;  %1543 = vmatmul.mubr.f32.vlgmr.msra.gmra.mxu0 %v1781_v49 }
 0x102   :  { %1549 = vmatpush3.msra.mxu1 %v1796_v2  ;;  %1563 = vmatpush3.msra.mxu0 %v830_v12 }
 0x103   :  { %1550 = vmatprep.subr.mxu1 %v1801_v7  ;;  %1564 = vmatprep.subr.mxu0 %v837_v17 }
 0x104   :  { %1531 = vmatprep.mubr.f32.mxu1 %v1778_v45  ;;  %1551 = vmatpush3.msra.mxu1 %v1801_v7 }
 0x105   :  { %1565 = vmatpush3.msra.mxu0 %v837_v17  ;;  %1532 = vmatmul.mubr.f32.gmra.mxu1 %v1783_v55 }
 0x106   :  { %1552 = vmatprep.subr.mxu1 %v1785_v58  ;;  %1566 = vmatprep.subr.mxu0 %v844_v14 }
 0x107   :  { %1545 = vmatprep.mubr.f32.mxu0 %v1788_v60  ;;  %1553 = vmatpush3.msra.mxu1 %v1785_v58 }
 0x108   :  { %1567 = vmatpush3.msra.mxu0 %v844_v14  ;;  %1554 = vmatprep.subr.mxu1 %v1791_v0  ;;  %v1325_v14 = vpop.permute.xlu1 %1324 }
 0x109   :  { %1546 = vmatmul.mubr.f32.gmra.mxu0 %v1794_v1  ;;  %1568 = vmatprep.subr.mxu0 %v851_v19 }
 0x10a   :  { %1555 = vmatpush3.msra.mxu1 %v1791_v0  ;;  %1556 = vmatprep.mubr.f32.mxu1 %v765_v54 }
 0x10b   :  { %1569 = vmatpush3.msra.mxu0 %v851_v19  ;;  %1557 = vmatmul.mubr.f32.vlgmr.msra.gmra.mxu1 %v775_v63 }
 0x10c   :  { %1576 = vmatprep.subr.mxu1 %v1796_v2  ;;  %1570 = vmatprep.mubr.f32.mxu0 %v1754_v52  ;;  %v1335_v27 = vpop.permute.xlu1 %1334 }
 0x10d   :  { %1577 = vmatpush3.msra.mxu1 %v1796_v2  ;;  %1571 = vmatmul.mubr.f32.vlgmr.msra.gmra.mxu0 %v1774_v34 }
 0x10e   :  { %1578 = vmatprep.subr.mxu1 %v1801_v7  ;;  %1559 = vmatprep.mubr.f32.mxu1 %v785_v5 }
 0x10f   :  { %1579 = vmatpush3.msra.mxu1 %v1801_v7  ;;  %1573 = vmatprep.mubr.f32.mxu0 %v1778_v45 }
 0x110   :  { %1560 = vmatmul.mubr.f32.gmra.mxu1 %v795_v10  ;;  %1580 = vmatprep.subr.mxu1 %v1785_v58  ;;  %v1320_v10 = vpop.permute.xlu0 %1319 }
 0x111   :  { %1581 = vmatpush3.msra.mxu1 %v1785_v58  ;;  %1574 = vmatmul.mubr.f32.gmra.mxu0 %v1783_v55 }
 0x112   :  { %1582 = vmatprep.subr.mxu1 %v1791_v0  ;;  %1584 = vmatprep.mubr.f32.mxu1 %v1754_v52 }
 0x113   :  { %1583 = vmatpush3.msra.mxu1 %v1791_v0 }
 0x114   :  { %1585 = vmatmul.mubr.f32.vlgmr.msra.gmra.mxu1 %v1774_v34  ;;  %v1330_v26 = vpop.permute.xlu0 %1329 }
 0x115   :  { %1587 = vmatprep.mubr.f32.mxu1 %v1778_v45 }
 0x118   :  { %1588 = vmatmul.mubr.f32.gmra.mxu1 %v1783_v55 }
 0x1b6   :  { %v1516_v53 = vpop.f32.mrf.mxu0 }
 0x1b7   :  { %v780_v52 = vadd.f32 %v1516_v53, %v669_v35 }
 0x1b8   :  { %v769_v54 = vpop.f32.mrf.mxu0 }
 0x1b9   :  { %v770_v40 = vadd.f32 %v769_v54, %v664_v38 }
 0x1bb   :  { %v1519_v29 = vpop.f32.mrf.mxu0 }
 0x1bc   :  { %v800_v43 = vadd.f32 %v1519_v29, %v679_v42 }
 0x1bd   :  { %v789_v30 = vpop.f32.mrf.mxu0 }
 0x1be   :  { %v790_v48 = vadd.f32 %v789_v30, %v674_v47 }
 0x1bf   :  { %v1530_v31 = vpop.f32.mrf.mxu1 }
 0x1c0   :  { %v897_v41 = vadd.f32 %v1530_v31, %v780_v52 }
 0x1c1   :  { %v890_v32 = vpop.f32.mrf.mxu1  ;;  %v1544_v33 = vpop.f32.mrf.mxu0 }
 0x1c2   :  { %v891_v44 = vadd.f32 %v890_v32, %v770_v40  ;;  %v996_v49 = vadd.f32 %v1544_v33, %v897_v41  ;;  %v1359_v33 = vlaneseq  ;;  %v1357_v41 = vpop.permute.xlu0 %1356 }
 0x1c3   :  { %v988_v37 = vpop.f32.mrf.mxu0 }
 0x1c4   :  { %v989_v56 = vadd.f32 %v988_v37, %v891_v44  ;;  %v1360_v37 = vshrl.u32 %v1359_v33, 7 }
 0x1c5   :  { %v1533_v36 = vpop.f32.mrf.mxu1 }
 0x1c6   :  { %v909_v50 = vadd.f32 %v1533_v36, %v800_v43 }
 0x1c7   :  { %v902_v39 = vpop.f32.mrf.mxu1 }
 0x1c8   :  { %v903_v57 = vadd.f32 %v902_v39, %v790_v48  ;;  %v1361_v39 = vsub.s32 0, %v1360_v37 }
 0x1c9   :  { %v1547_v34 = vpop.f32.mrf.mxu0 }
 0x1ca   :  { %v1010_v61 = vadd.f32 %v1547_v34, %v909_v50  ;;  %v1362_v42 = vrot.slane %v1357_v41, %v1361_v39 }
 0x1cb   :  { %v1002_v45 = vpop.f32.mrf.mxu0  ;;  %v1558_v46 = vpop.f32.mrf.mxu1 }
 0x1cc   :  { %v1095_v58 = vadd.f32 %v1558_v46, %v996_v49  ;;  %v1003_v1 = vadd.f32 %v1002_v45, %v903_v57 }
 0x1cd   :  { %v1086_v51 = vpop.f32.mrf.mxu1  ;;  %v1572_v55 = vpop.f32.mrf.mxu0 }
 0x1ce   :  { %v1087_v62 = vadd.f32 %v1086_v51, %v989_v56  ;;  %v1200_v2 = vadd.f32 %v1572_v55, %v1095_v58 }
 0x1cf   :  { %v1193_v59 = vpop.f32.mrf.mxu0 }
 0x1d0   :  { %v1561_v60 = vpop.f32.mrf.mxu1  ;;  %v1194_v5 = vadd.f32 %v1193_v59, %v1087_v62 }
 0x1d1   :  { %v1575_v0 = vpop.f32.mrf.mxu0  ;;  %v1111_v3 = vadd.f32 %v1561_v60, %v1010_v61 }
 0x1d2   :  { %v1102_v63 = vpop.f32.mrf.mxu1 }
 0x1d3   :  { %v1103_v6 = vadd.f32 %v1102_v63, %v1003_v1  ;;  %v1205_v8 = vpop.f32.mrf.mxu0  ;;  %v1212_v11 = vadd.f32 %v1575_v0, %v1111_v3 }
 0x1d4   :  { %v1586_v4 = vpop.f32.mrf.mxu1 }
 0x1d5   :  { %v1293_v7 = vadd.f32 %v1586_v4, %v1200_v2  ;;  %v1206_v16 = vadd.f32 %v1205_v8, %v1103_v6 }
 0x1d6   :  { %v1286_v9 = vpop.f32.mrf.mxu1 }
 0x1d7   :  { %v1309_v12 = vmax.f32 %v1293_v7, 0.0  ;;  %v1287_v13 = vadd.f32 %v1286_v9, %v1194_v5 }
 0x1d8   :  { %v1589_v15 = vpop.f32.mrf.mxu1 }
 0x1d9   :  { %v1308_v17 = vmax.f32 %v1287_v13, 0.0  ;;  %v1305_v18 = vadd.f32 %v1589_v15, %v1212_v11  ;;  %v1338_v20 = vmul.f32 %v1325_v14, %v1309_v12 }
 0x1da   :  { %v1298_v19 = vpop.f32.mrf.mxu1 }
 0x1db   :  { %v1337_v21 = vmul.f32 %v1320_v10, %v1308_v17  ;;  %v1311_v22 = vmax.f32 %v1305_v18, 0.0  ;;  %v1299_v23 = vadd.f32 %v1298_v19, %v1206_v16  ;;  %v1342_v28 = vsel %vm58_vm0, %v1338_v20, 0.0 }
 0x1dd   :  { %v1341_v24 = vsel %vm58_vm0, %v1337_v21, 0.0  ;;  %v1310_v25 = vmax.f32 %v1299_v23, 0.0  ;;  %v1340_v53 = vmul.f32 %v1335_v27, %v1311_v22 }
 0x1de   :  { %v1343_v29 = vadd.f32 %v1342_v28, %v1341_v24 }
 0x1df   :  { %v1339_v54 = vmul.f32 %v1330_v26, %v1310_v25  ;;  %v1346_v32 = vsel %vm58_vm0, %v1340_v53, 0.0 }
 0x1e1   :  { %v1344_v30 = vsel %vm58_vm0, %v1339_v54, 0.0 }
 0x1e2   :  { %v1345_v31 = vadd.f32 %v1344_v30, %v1343_v29 }
 0x1e4   :  { %v1347_v35 = vadd.f32 %v1346_v32, %v1345_v31 }
 0x1e6   :  { %v1348_v36 = vrot.slane %v1347_v35, 4 }
 0x1e8   :  { %v1349_v38 = vadd.f32 %v1348_v36, %v1347_v35 }
 0x1ea   :  { %v1350_v52 = vrot.slane %v1349_v38, 2 }
 0x1ec   :  { %v1351_v40 = vadd.f32 %v1350_v52, %v1349_v38 }
 0x1ee   :  { %v1352_v34 = vrot.slane %v1351_v40, 1 }
 0x1f0   :  { %v1353_v43 = vadd.f32 %v1352_v34, %v1351_v40 }
 0x1f2   :  { %v1363_v44 = vadd.f32 %v1362_v42, %v1353_v43 }
 0x1f4   :  { %1365 = vst.msk [vmem:[#allocation3] sm:$0x1] %vm1364_vm2, %v1363_v44 }
 0x1f5   :  { %1605 = shalt.err (!%p1602_p4)
}
 0x1f6   :  { %1375 = dma.vmem_to_hbm [thread:$0]  %s1373_s13, 16, %s1876_s7, [#allocation4]  }
 0x1f7   :  { %1614 = dma.done.wait [#allocation4], 16  }
 0x1f8   :  { %1615 = vsyncadd [#allocation4], 4294967280 }
 0x1f9   :  { %1379 = vsyncpa [#allocation4], 1 }

</bundles_post_ra>
